<compile_context>
chip_gen: v5e
topology: v5e:2x2
jax: 0.10.0
libtpu: 0.0.40
codegen_flags: <defaults>
</compile_context>

<pallas_src>
import jax
import jax.numpy as jnp
from jax.experimental import pallas as pl
from jax.experimental.pallas import tpu as pltpu

EPS = 1e-5  # PyTorch BatchNorm2d default eps


def _round_up(x, m):
    return ((x + m - 1) // m) * m


def _cdiv(a, b):
    return (a + b - 1) // b


def _pad2(a, rows, cols):
    pr, pc = rows - a.shape[0], cols - a.shape[1]
    if pr == 0 and pc == 0:
        return a
    return jnp.pad(a, ((0, pr), (0, pc)))


def _vmem_limit_bytes():
    """Generation-specific VMEM budget: v5e/v6e have 128 MiB physical, v7x 64 MiB."""
    try:
        kind = jax.devices()[0].device_kind.lower()
    except Exception:
        kind = ""
    if "v5" in kind or "v6" in kind:
        return 64 * 1024 * 1024
    return 48 * 1024 * 1024


# ----------------------------- Pallas kernels ------------------------------
def _make_kernel(mode, relu, single_k_step):
    """Build a fused conv-matmul + BN-shift (+skip) (+ReLU) kernel.

    mode: 'plain' | 'skip' (identity residual) | 'skip1x1' (fused 1x1-conv skip)
    single_k_step: True -> no VMEM accumulator, direct store.
    Ref order: patches, weights, shift, [skip...], out, [acc scratch].
    """

    def _epilogue(acc, refs, o_ref):
        y = acc + refs[2][...]                      # folded BN / bias shift
        if mode == "skip":
            y = y + refs[3][...].astype(jnp.float32)
        elif mode == "skip1x1":
            # skip dot only here (last K step) -> single lane-dense MXU pass
            y = y + jnp.dot(refs[3][...], refs[4][...],
                            preferred_element_type=jnp.float32)
        if relu:
            y = jnp.maximum(y, 0.0)
        o_ref[...] = y.astype(o_ref.dtype)

    if single_k_step:
        def kernel(*refs):
            o_ref = refs[-1]
            acc = jnp.dot(refs[0][...], refs[1][...],
                          preferred_element_type=jnp.float32)
            _epilogue(acc, refs, o_ref)
        return kernel

    def kernel(*refs):
        o_ref, acc_ref = refs[-2], refs[-1]

        @pl.when(pl.program_id(2) == 0)
        def _init():
            acc_ref[...] = jnp.zeros_like(acc_ref)

        acc_ref[...] += jnp.dot(refs[0][...], refs[1][...],
                                preferred_element_type=jnp.float32)

        @pl.when(pl.program_id(2) == pl.num_programs(2) - 1)
        def _fin():
            _epilogue(acc_ref[...], refs, o_ref)

    return kernel


# ------------------------------ matmul wrapper ------------------------------
def conv_bn_act(patches, w_cols, shift, *, skip=None, skip_x=None, skip_w=None,
                relu=True, out_dtype=jnp.bfloat16, tm=512, tn=256, tk=1024):
    """out[m,c] = relu?( (patches @ w_cols)[m,c] + shift[c] (+ skip term[m,c]) )

    BN scale must already be folded into `w_cols`; BN/bias shifts into `shift`.
    MXU operands are bf16; accumulation is f32.
    """
    M, K = patches.shape
    C = w_cols.shape[1]

    # Lane-dense output channels (multiple of 128 -> unmasked vst).
    C128 = _round_up(C, 128)
    tn_eff = min(tn, C128)
    Cp = _round_up(C128, tn_eff)

    # K (reduction) tiling: single full-K step for small K (no zero-pad blow-up
    # for ResNet K = 9*Cin); otherwise 128-aligned chunks with minimal padding.
    if K <= 2048:
        tk_eff, Kp = K, K
    else:
        nk = _cdiv(K, tk)
        tk_eff = _round_up(_cdiv(K, nk), 128)
        Kp = _round_up(K, tk_eff)
    single_k = (Kp == tk_eff)

    # Adaptive M tiling (no whole-matrix pad copy for aligned shapes).
    Mp8 = _round_up(M, 8)
    tm_eff = min(tm, Mp8)
    Mp = _round_up(M, tm_eff)
    # Keep >= 2 programs on the parallel (m, n) grid so both TensorCores of a
    # v7x chip / megacore stay busy on small layers.
    while (Mp // tm_eff) * (Cp // tn_eff) < 2 and tm_eff > 8:
        tm_eff = max(8, _round_up(tm_eff // 2, 8))
        Mp = _round_up(M, tm_eff)

    patches = _pad2(patches, Mp, Kp).astype(jnp.bfloat16)
    w_cols = _pad2(w_cols, Kp, Cp).astype(jnp.bfloat16)
    shift = _pad2(shift.reshape(1, C).astype(jnp.float32), 1, Cp)

    in_specs = [
        pl.BlockSpec((tm_eff, tk_eff), lambda m, n, k: (m, k)),   # patch tile
        pl.BlockSpec((tk_eff, tn_eff), lambda m, n, k: (k, n)),   # weight tile
        pl.BlockSpec((1, tn_eff), lambda m, n, k: (0, n)),        # shift
    ]
    args = [patches, w_cols, shift]

    if skip is not None:
        mode = "skip"
        skip = _pad2(skip, Mp, Cp).astype(jnp.bfloat16)
        in_specs.append(pl.BlockSpec((tm_eff, tn_eff), lambda m, n, k: (m, n)))
        args.append(skip)
    elif skip_x is not None:
        mode = "skip1x1"
        Ks = skip_x.shape[1]
        Ksp = _round_up(Ks, 128)  # lane-dense skip contraction dim
        skip_x = _pad2(skip_x, Mp, Ksp).astype(jnp.bfloat16)
        skip_w = _pad2(skip_w, Ksp, Cp).astype(jnp.bfloat16)
        in_specs.append(pl.BlockSpec((tm_eff, Ksp), lambda m, n, k: (m, 0)))
        in_specs.append(pl.BlockSpec((Ksp, tn_eff), lambda m, n, k: (0, n)))
        args += [skip_x, skip_w]
    else:
        mode = "plain"

    kernel = _make_kernel(mode, relu, single_k)
    scratch = [] if single_k else [pltpu.VMEM((tm_eff, tn_eff), jnp.float32)]

    out = pl.pallas_call(
        kernel,
        out_shape=jax.ShapeDtypeStruct((Mp, Cp), out_dtype),
        grid=(Mp // tm_eff, Cp // tn_eff, Kp // tk_eff),
        in_specs=in_specs,
        out_specs=pl.BlockSpec((tm_eff, tn_eff), lambda m, n, k: (m, n)),
        scratch_shapes=scratch,
        compiler_params=pltpu.CompilerParams(
            dimension_semantics=("parallel", "parallel", "arbitrary"),
            vmem_limit_bytes=_vmem_limit_bytes(),
        ),
    )(*args)
    return out[:M, :C]


# ------------------------------ JAX glue -------------------------------------
def im2col(x_nhwc, kh, kw, stride, pad):
    """Extract conv patches -> (N*Ho*Wo, kh*kw*C), column order = (kh, kw, c)."""
    N, H, W, C = x_nhwc.shape
    xp = jnp.pad(x_nhwc, ((0, 0), (pad, pad), (pad, pad), (0, 0)))
    Ho = (H + 2 * pad - kh) // stride + 1
    Wo = (W + 2 * pad - kw) // stride + 1
    cols = []
    for i in range(kh):
        for j in range(kw):
            cols.append(xp[:, i:i + stride * Ho:stride, j:j + stride * Wo:stride, :])
    p = jnp.concatenate(cols, axis=-1)          # (N, Ho, Wo, kh*kw*C)
    return p.reshape(N * Ho * Wo, kh * kw * C), Ho, Wo


def torch_conv_w_to_mat(w_oihw):
    """PyTorch (O, I, KH, KW) weight -> (KH*KW*I, O), matching im2col order."""
    return jnp.transpose(w_oihw, (2, 3, 1, 0)).reshape(-1, w_oihw.shape[0])


def fold_bn(gamma, beta, mean, var, conv_bias):
    """Fold eval-mode BN (and conv bias) into per-channel scale/shift."""
    s = gamma / jnp.sqrt(var + EPS)
    t = beta - mean * s + conv_bias * s
    return s, t


def residual_forward(x_nchw, params, use_1x1_conv, strides):
    """Pallas implementation of Residual.forward (NCHW in, NCHW out)."""
    in_dtype = x_nchw.dtype
    x = jnp.transpose(x_nchw, (0, 2, 3, 1)).astype(jnp.bfloat16)  # NHWC, bf16
    N, H, W, Cin = x.shape
    Cout = params["w1"].shape[0]

    # conv1 (3x3, stride=strides, pad=1) + BN1 + ReLU -- fused Pallas kernel
    s1, t1 = fold_bn(params["g1"], params["be1"], params["m1"], params["v1"],
                     params["b1"])
    w1 = torch_conv_w_to_mat(params["w1"]) * s1[None, :]  # BN scale folded in
    p1, Ho, Wo = im2col(x, 3, 3, strides, 1)
    y1 = conv_bn_act(p1, w1, t1, relu=True, out_dtype=jnp.bfloat16)
    y1 = y1.reshape(N, Ho, Wo, Cout)                       # bf16 intermediate

    # conv2 (3x3, stride=1, pad=1) + BN2 + skip add + ReLU -- fused kernel
    s2, t2 = fold_bn(params["g2"], params["be2"], params["m2"], params["v2"],
                     params["b2"])
    w2 = torch_conv_w_to_mat(params["w2"]) * s2[None, :]
    p2, _, _ = im2col(y1, 3, 3, 1, 1)

    if use_1x1_conv:
        # 1x1 conv skip (stride=strides, no padding) fused into the conv2 kernel
        xs = x[:, ::strides, ::strides, :].reshape(-1, Cin)
        wsk = torch_conv_w_to_mat(params["wsk"])           # (Cin, Cout)
        t_tot = t2 + params["bsk"]                         # fold skip bias
        out = conv_bn_act(p2, w2, t_tot, skip_x=xs, skip_w=wsk,
                          relu=True, out_dtype=jnp.bfloat16)
    else:
        if Cin != Cout or strides != 1:
            raise ValueError("identity skip requires Cin == Cout and stride == 1")
        skip = x.reshape(N * H * W, Cin)
        out = conv_bn_act(p2, w2, t2, skip=skip, relu=True,
                          out_dtype=jnp.bfloat16)

    out = out.reshape(N, Ho, Wo, Cout)
    # NCHW, cast back to caller dtype outside the kernel (store traffic from the
    # Pallas kernel stays bf16).
    return jnp.transpose(out, (0, 3, 1, 2)).astype(in_dtype)


# --------------------------- reference (plain JAX) ---------------------------
def ref_residual(x, params, use_1x1_conv, strides):
    def conv(z, w, b, stride, pad):
        y = jax.lax.conv_general_dilated(
            z, w, window_strides=(stride, stride),
            padding=((pad, pad), (pad, pad)),
            dimension_numbers=("NCHW", "OIHW", "NCHW"))
        return y + b[None, :, None, None]

    def bn(z, g, be, m, v):
        return (g[None, :, None, None] * (z - m[None, :, None, None])
                / jnp.sqrt(v[None, :, None, None] + EPS) + be[None, :, None, None])

    y = conv(x, params["w1"], params["b1"], strides, 1)
    y = jnp.maximum(bn(y, params["g1"], params["be1"], params["m1"], params["v1"]), 0.0)
    y = conv(y, params["w2"], params["b2"], 1, 1)
    y = bn(y, params["g2"], params["be2"], params["m2"], params["v2"])
    sk = conv(x, params["wsk"], params["bsk"], strides, 0) if use_1x1_conv else x
    return jnp.maximum(y + sk, 0.0)


# ------------------------------ params init ----------------------------------
def init_params(key, cin, cout, use_1x1_conv):
    ks = jax.random.split(key, 14)
    p = dict(
        w1=0.1 * jax.random.normal(ks[0], (cout, cin, 3, 3), jnp.float32),
        b1=0.1 * jax.random.normal(ks[1], (cout,), jnp.float32),
        g1=1.0 + 0.1 * jax.random.normal(ks[2], (cout,), jnp.float32),
        be1=0.1 * jax.random.normal(ks[3], (cout,), jnp.float32),
        m1=0.1 * jax.random.normal(ks[4], (cout,), jnp.float32),
        v1=jax.random.uniform(ks[5], (cout,), jnp.float32, 0.5, 1.5),
        w2=0.1 * jax.random.normal(ks[6], (cout, cout, 3, 3), jnp.float32),
        b2=0.1 * jax.random.normal(ks[7], (cout,), jnp.float32),
        g2=1.0 + 0.1 * jax.random.normal(ks[8], (cout,), jnp.float32),
        be2=0.1 * jax.random.normal(ks[9], (cout,), jnp.float32),
        m2=0.1 * jax.random.normal(ks[10], (cout,), jnp.float32),
        v2=jax.random.uniform(ks[11], (cout,), jnp.float32, 0.5, 1.5),
    )
    if use_1x1_conv:
        p["wsk"] = 0.1 * jax.random.normal(ks[12], (cout, cin, 1, 1), jnp.float32)
        p["bsk"] = 0.1 * jax.random.normal(ks[13], (cout,), jnp.float32)
    return p


if __name__ == "__main__":
    key = jax.random.PRNGKey(0)
    kx, kp1, kp2 = jax.random.split(key, 3)
    x = jax.random.normal(kx, (2, 4, 16, 16), jnp.float32)  # NCHW like PyTorch

    # Config A: identity skip (input_channels == num_channels, stride 1)
    pA = init_params(kp1, 4, 4, use_1x1_conv=False)
    outA = jax.block_until_ready(residual_forward(x, pA, False, 1))
    refA = ref_residual(x, pA, False, 1)
    assert outA.shape == (2, 4, 16, 16)
    assert jnp.allclose(outA, refA, rtol=3e-2, atol=3e-2), (
        float(jnp.max(jnp.abs(outA - refA))))

    # Config B: 1x1-conv skip, stride 2, channel expansion 4 -> 8
    pB = init_params(kp2, 4, 8, use_1x1_conv=True)
    outB = jax.block_until_ready(residual_forward(x, pB, True, 2))
    refB = ref_residual(x, pB, True, 2)
    assert outB.shape == (2, 8, 8, 8)
    assert jnp.allclose(outB, refB, rtol=3e-2, atol=3e-2), (
        float(jnp.max(jnp.abs(outB - refB))))

    print("KERNEL_OK")
</pallas_src>

<mosaic_0001>
module attributes {stable_mosaic.version = 11 : i64} {
  func.func @kernel(%arg0: i32, %arg1: i32, %arg2: i32, %arg3: memref<256x36xbf16, #tpu.memory_space<vmem>>, %arg4: memref<36x128xbf16, #tpu.memory_space<vmem>>, %arg5: memref<1x128xf32, #tpu.memory_space<vmem>>, %arg6: memref<256x128xbf16, #tpu.memory_space<vmem>>) attributes {dimension_semantics = [#tpu.dimension_semantics<parallel>, #tpu.dimension_semantics<parallel>, #tpu.dimension_semantics<arbitrary>], iteration_bounds = array<i64: 2, 1, 1>, scalar_prefetch = 0 : i64, scratch_operands = 0 : i64, tpu.core_type = #tpu.core_type<tc>, window_params = [{transform_indices = @transform_0, window_bounds = array<i64: 256, 36>}, {transform_indices = @transform_1, window_bounds = array<i64: 36, 128>}, {transform_indices = @transform_2, window_bounds = array<i64: 1, 128>}, {transform_indices = @transform_3, window_bounds = array<i64: 256, 128>}]} {
    %c0 = arith.constant 0 : index
    %c0_0 = arith.constant 0 : index
    %0 = vector.load %arg3[%c0, %c0_0] : memref<256x36xbf16, #tpu.memory_space<vmem>>, vector<256x36xbf16>
    %c0_1 = arith.constant 0 : index
    %c0_2 = arith.constant 0 : index
    %1 = vector.load %arg4[%c0_1, %c0_2] : memref<36x128xbf16, #tpu.memory_space<vmem>>, vector<36x128xbf16>
    %cst = arith.constant dense<0.000000e+00> : vector<256x128xf32>
    %2 = tpu.matmul %0, %1, %cst {dimension_numbers = #tpu.dot_dimension_numbers<[1], [0], [0], [1], [0, 0, 1, 1], [], []>} : vector<256x36xbf16>, vector<36x128xbf16>, vector<256x128xf32> -> vector<256x128xf32>
    %c0_3 = arith.constant 0 : index
    %c0_4 = arith.constant 0 : index
    %3 = vector.load %arg5[%c0_3, %c0_4] : memref<1x128xf32, #tpu.memory_space<vmem>>, vector<1x128xf32>
    %4 = vector.broadcast %3 : vector<1x128xf32> to vector<256x128xf32>
    %5 = arith.addf %2, %4 : vector<256x128xf32>
    %cst_5 = arith.constant 0.000000e+00 : f32
    %6 = vector.broadcast %cst_5 : f32 to vector<256x128xf32>
    %7 = arith.maximumf %5, %6 : vector<256x128xf32>
    %8 = arith.truncf %7 : vector<256x128xf32> to vector<256x128xbf16>
    %c0_6 = arith.constant 0 : index
    %c0_7 = arith.constant 0 : index
    %9 = vector.load %arg6[%c0_6, %c0_7] : memref<256x128xbf16, #tpu.memory_space<vmem>>, vector<256x128xbf16>
    tpu.vector_store %arg6[%c0_6, %c0_7], %8 {strides = array<i32>} : memref<256x128xbf16, #tpu.memory_space<vmem>>, vector<256x128xbf16>,
    return
  }
  func.func @transform_0(%arg0: i32, %arg1: i32, %arg2: i32) -> (i32, i32) {
    %c0_i32 = arith.constant 0 : i32
    return %arg0, %arg2 : i32, i32
  }
  func.func @transform_1(%arg0: i32, %arg1: i32, %arg2: i32) -> (i32, i32) {
    %c0_i32 = arith.constant 0 : i32
    return %arg2, %arg1 : i32, i32
  }
  func.func @transform_2(%arg0: i32, %arg1: i32, %arg2: i32) -> (i32, i32) {
    %c0_i32 = arith.constant 0 : i32
    %c0_i32_0 = arith.constant 0 : i32
    return %c0_i32, %arg1 : i32, i32
  }
  func.func @transform_3(%arg0: i32, %arg1: i32, %arg2: i32) -> (i32, i32) {
    %c0_i32 = arith.constant 0 : i32
    return %arg0, %arg1 : i32, i32
  }
}

</mosaic_0001>

<bundles_post_ra>
// kernel: tpu_custom_call.1
= control target key start
LH: loop header
LB: loop body
LE: loop exit
PB: predicated region body
PF: predicated region fallthrough
CT: control target
= control target key end

     0   :  { %8 = vsyncpa [#allocation3], 0  ;;  %s1336_s0 = inlined_call_operand.vmem [shape: bf16[512,36], index: 0, kind: input, shape index: {}]   ;;  %s1337_s1 = inlined_call_operand.vmem [shape: bf16[36,128], index: 1, kind: input, shape index: {}]   ;;  %s1338_s2 = inlined_call_operand.vmem [shape: f32[1,128], index: 2, kind: input, shape index: {}]   ;;  %s1339_s3 = inlined_call_operand.hbm [shape: bf16[512,128], index: 3, kind: output, shape index: {}]  }
   0x1   :  { %10 = vsyncpa [#allocation3 + $0x1], 0  ;;  %s1137_s12 = smov 0   ;;  %s1139_s13 = smov 0  }
   0x2   :  { %s1141_s14 = smov 0   ;;  %s1143_s15 = smov 0  }
   0x3   :  { %s1145_s16 = smov 0   ;;  %s1147_s17 = smov 0  }
   0x4 LB: > { %s751_s18 = sadd.s32 4294967295, %s1113_s17   ;;  %s752_s19 = sadd.s32 4294967294, %s1113_s17   ;;  %s1113_s17 = sphi %s1147_s17, %s16_s17   ;;  %s1109_s16 = sphi %s1145_s16, %s1346_s16   ;;  %s1105_s15 = sphi %s1143_s15, %s1345_s15   ;;  %s1101_s14 = sphi %s1141_s14, %s1344_s14   ;;  %s1097_s13 = sphi %s1139_s13, %s1343_s13   ;;  %s1093_s12 = sphi %s1137_s12, %s1342_s12  }
   0x5   : > { %s35_s20 = sadd.s32 1, %s1109_s16  ;;  %s126_s21 = sadd.s32 1, %s1101_s14 }
   0x6   : > { %p37_p0 = scmp.ge.s32.totalorder %s35_s20, 2  ;;  %p136_p1 = scmp.ne.s32.totalorder %s1101_s14, %s1097_s13 }
   0x7   : > { %p137_p2 = scmp.eq.s32.totalorder %s751_s18, 1  ;;  %p142_p3 = scmp.ne.s32.totalorder %s1097_s13, %s1093_s12 }
   0x8   : > { %s1348_s20 = smov (%p37_p0, %s35_s20), 0  ;;  %p143_p5 = scmp.eq.s32.totalorder %s752_s19, 1 }
   0x9   : > { %p1177_p4 = por %p137_p2, %p136_p1  ;;  %s121_s23 = ssub.s32 %s1109_s16, %s1348_s20 }
   0xa   : > { %p757_p6 = scmp.ge.s32.totalorder %s1113_s17, 1  ;;  %p124_p7 = scmp.eq.s32.totalorder %s121_s23, 0 }
   0xb   : > { %p1184_p8 = por %p143_p5, %p142_p3  ;;  %p191_p9 = scmp.lt.s32.totalorder %s1113_s17, 3 }
   0xc   : > { %s1190_s25 = scalar_select %p124_p7, %s1101_s14, %s126_s21  }
   0xd   : > { %p192_p10 = pnand %p757_p6, %p191_p9 }
   0xe   : > { %s759_s28 = sshll.u32 (!%p192_p10), %s1105_s15, 5  ;;  %s226_s18 = sand.u32 (!%p192_p10), 1, %s1097_s13  }
   0xf   : > { %195 = sbr.rel (%p192_p10) target bundleno = 237 (0xed), region = 32  ;;  %p230_p11 = scmp.lt.s32.totalorder (!%p192_p10), %s759_s28, 63 }
  0x10   : > { %s758_s19 = sshll.u32 (!%p192_p10), %s226_s18, 7  ;;  %s872_s23 = sshll.u32 (!%p192_p10), %s1105_s15, 7 }
  0x11   : > { %s1253_s21 = scalar_lea.vmem (!%p192_p10), [#allocation2], %s758_s19  ;;  %s627_s30 = scalar_lea.sflag (!%p192_p10), [#allocation3], %s226_s18 }
  0x12   : > { %s640_s15 = sshll.u32 (!%p192_p10), %s1253_s21, 4  ;;  %s1055_s8 = scalar_lea.hbm (!%p192_p10), %s1339_s3, 256  ;;  %s641_s15 = int_to_ptr.vmem [resolvable:$true] %s640_s15 }
  0x14   : > { %v288_v0 = vld [vmem:[%s1337_s1 + $0x10] sm:$0x3]  ;;  %vm437_vm0 = vcmask 1041408   ;;  %s1350_s28 = smov (!%p230_p11, %s759_s28), 63  ;;  %v871_v4 = vld [vmem:[%s1337_s1 + $0x8] sm:$0xff]  ;;  %v870_v5 = vld [vmem:[%s1337_s1] sm:$0xff] }
  0x15   : > { %v382_v1 = vunpack.c.l.b16 %v288_v0  ;;  %s760_s4 = sshll.u32 %s1350_s28, 2  ;;  %vm388_vm1 = vcmask 293888   ;;  %v1242_v24 = vld [vmem:[%s1338_s2] ss:$0 sm:$0xff]  ;;  %s639_s28 = scalar_lea.hbm %s1339_s3, %s872_s23 }
  0x16   : > { %s1205_s9 = scalar_lea.vmem %s1336_s0, %s760_s4  ;;  %s642_s29 = sshll.u32 %s639_s28, 4  ;;  %s643_s29 = int_to_ptr.hbm [resolvable:$true] %s642_s29 }
  0x17   : > { %v385_v2 = vpack.c.b16 %v382_v1, %v382_v1  ;;  %v854_v6 = vld [vmem:[%s1205_s9] sm:$0xff]  ;;  %v855_v10 = vld [vmem:[%s1205_s9 + $0x8] sm:$0xff]  ;;  %v856_v14 = vld [vmem:[%s1205_s9 + $0x10] sm:$0xff]  ;;  %s1049_s4 = sshra.s32 %s643_s29, 4  ;;  %s1050_s4 = int_to_ptr.hbm [resolvable:$true] %s1049_s4 }
  0x18   : > { %v858_v7 = vld [vmem:[%s1205_s9 + $0x20] sm:$0xff]  ;;  %v859_v11 = vld [vmem:[%s1205_s9 + $0x28] sm:$0xff]  ;;  %v860_v15 = vld [vmem:[%s1205_s9 + $0x30] sm:$0xff]  ;;  %s1051_s5 = scalar_lea.hbm %s1050_s4, 128  ;;  %p1056_p1 = scmp.lt.s32.totalorder %s1050_s4, %s1339_s3 }
  0x19   : > { %v439_v3 = vsel %vm437_vm0, %v385_v2, 0  ;;  %v862_v8 = vld [vmem:[%s1205_s9 + $0x40] sm:$0xff]  ;;  %v863_v12 = vld [vmem:[%s1205_s9 + $0x48] sm:$0xff]  ;;  %v864_v16 = vld [vmem:[%s1205_s9 + $0x50] sm:$0xff]  ;;  %p1052_p12 = scmp.ne.s32.totalorder %s1050_s4, %s1051_s5  ;;  %p1057_p2 = scmp.lt.s32.totalorder %s1055_s8, %s1051_s5 }
  0x1a   : > { %446 = vmatpush.bf16.msra.mxu0 %v439_v3  ;;  %968 = vmatpush.bf16.msra.mxu1 %v439_v3  ;;  %v866_v9 = vld [vmem:[%s1205_s9 + $0x60] sm:$0xff]  ;;  %v867_v13 = vld [vmem:[%s1205_s9 + $0x68] sm:$0xff]  ;;  %v868_v17 = vld [vmem:[%s1205_s9 + $0x70] sm:$0xff] }
  0x1b   : > { %969 = vmatpush.bf16.msra.mxu2 %v439_v3  ;;  %970 = vmatpush.bf16.msra.mxu3 %v439_v3  ;;  %v857_v18 = vld [vmem:[%s1205_s9 + $0x18] sm:$0xff]  ;;  %p1053_p13 = pnand %p1052_p12, %p1177_p4  ;;  %p1058_p3 = por %p1057_p2, %p1056_p1 }
  0x1c   : > { %v861_v19 = vld [vmem:[%s1205_s9 + $0x38] sm:$0xff] }
  0x1d   : > { %v865_v20 = vld [vmem:[%s1205_s9 + $0x58] sm:$0xff]  ;;  %p1054_p0 = pneg %p1053_p13 }
  0x1e   : > { %447 = vmatpush.bf16.msra.mxu0 %v871_v4  ;;  %971 = vmatpush.bf16.msra.mxu1 %v871_v4  ;;  %v869_v21 = vld [vmem:[%s1205_s9 + $0x78] sm:$0xff] }
  0x1f   : > { %972 = vmatpush.bf16.msra.mxu2 %v871_v4  ;;  %973 = vmatpush.bf16.msra.mxu3 %v871_v4  ;;  %p1059_p5 = pnand %p1058_p3, %p1054_p0 }
  0x22   : > { %448 = vmatpush.bf16.msra.mxu0 %v870_v5  ;;  %974 = vmatpush.bf16.msra.mxu1 %v870_v5 }
  0x23   : > { %975 = vmatpush.bf16.msra.mxu2 %v870_v5  ;;  %976 = vmatpush.bf16.msra.mxu3 %v870_v5 }
  0x25   : > { %833 = vmatmul.msk.bf16.vlgmr.msra.gmra.mxu0 %vm388_vm1, %v854_v6  ;;  %837 = vmatmul.msk.bf16.vlgmr.msra.gmra.mxu1 %vm388_vm1, %v858_v7 }
  0x26   : > { %841 = vmatmul.msk.bf16.vlgmr.msra.gmra.mxu2 %vm388_vm1, %v862_v8  ;;  %845 = vmatmul.msk.bf16.vlgmr.msra.gmra.mxu3 %vm388_vm1, %v866_v9 }
  0x35   : > { %834 = vmatmul.msk.bf16.gmra.mxu0 %vm388_vm1, %v855_v10  ;;  %838 = vmatmul.msk.bf16.gmra.mxu1 %vm388_vm1, %v859_v11 }
  0x36   : > { %842 = vmatmul.msk.bf16.gmra.mxu2 %vm388_vm1, %v863_v12  ;;  %846 = vmatmul.msk.bf16.gmra.mxu3 %vm388_vm1, %v867_v13 }
  0x45   : > { %835 = vmatmul.msk.bf16.gmra.mxu0 %vm388_vm1, %v856_v14  ;;  %839 = vmatmul.msk.bf16.gmra.mxu1 %vm388_vm1, %v860_v15 }
  0x46   : > { %843 = vmatmul.msk.bf16.gmra.mxu2 %vm388_vm1, %v864_v16  ;;  %847 = vmatmul.msk.bf16.gmra.mxu3 %vm388_vm1, %v868_v17 }
  0x55   : > { %836 = vmatmul.msk.bf16.gmra.mxu0 %vm388_vm1, %v857_v18  ;;  %840 = vmatmul.msk.bf16.gmra.mxu1 %vm388_vm1, %v861_v19 }
  0x56   : > { %844 = vmatmul.msk.bf16.gmra.mxu2 %vm388_vm1, %v865_v20  ;;  %848 = vmatmul.msk.bf16.gmra.mxu3 %vm388_vm1, %v869_v21 }
  0xa2   : > { %v450_v22 = vpop.f32.mrf.mxu0  ;;  %v470_v23 = vpop.f32.mrf.mxu1 }
  0xa3   : > { %v451_v25 = vadd.f32 %v1242_v24, %v450_v22  ;;  %v471_v26 = vadd.f32 %v1242_v24, %v470_v23 }
  0xa5   : > { %v530_v33 = vmax.f32 %v451_v25, 0.0  ;;  %v538_v34 = vmax.f32 %v471_v26, 0.0 }
  0xa9   : > { %v490_v27 = vpop.f32.mrf.mxu2  ;;  %v510_v28 = vpop.f32.mrf.mxu3 }
  0xaa   : > { %v452_v29 = vpop.f32.mrf.mxu0  ;;  %v472_v30 = vpop.f32.mrf.mxu1  ;;  %v491_v39 = vadd.f32 %v1242_v24, %v490_v27  ;;  %v511_v40 = vadd.f32 %v1242_v24, %v510_v28 }
  0xab   : > { %v453_v31 = vadd.f32 %v1242_v24, %v452_v29  ;;  %v473_v32 = vadd.f32 %v1242_v24, %v472_v30 }
  0xac   : > { %v546_v47 = vmax.f32 %v491_v39, 0.0  ;;  %v554_v48 = vmax.f32 %v511_v40, 0.0 }
  0xad   : > { %v531_v35 = vmax.f32 %v453_v31, 0.0  ;;  %v539_v36 = vmax.f32 %v473_v32, 0.0 }
  0xaf   : > { %v876_v37 = vpack.c.bf16 %v531_v35, %v530_v33  ;;  %v896_v38 = vpack.c.bf16 %v539_v36, %v538_v34 }
  0xb1   : > { %877 = vst [vmem:[%s1253_s21] sm:$0xff] %v876_v37   ;;  %v492_v41 = vpop.f32.mrf.mxu2  ;;  %v512_v42 = vpop.f32.mrf.mxu3 }
  0xb2   : > { %956 = vst [vmem:[%s1253_s21 + $0x20] sm:$0xff] %v896_v38   ;;  %v493_v43 = vadd.f32 %v1242_v24, %v492_v41  ;;  %v513_v44 = vadd.f32 %v1242_v24, %v512_v42  ;;  %v455_v45 = vpop.f32.mrf.mxu0  ;;  %v475_v46 = vpop.f32.mrf.mxu1 }
  0xb3   : > { %v456_v53 = vadd.f32 %v1242_v24, %v455_v45  ;;  %v476_v54 = vadd.f32 %v1242_v24, %v475_v46 }
  0xb4   : > { %v547_v49 = vmax.f32 %v493_v43, 0.0  ;;  %v555_v50 = vmax.f32 %v513_v44, 0.0 }
  0xb5   : > { %v532_v61 = vmax.f32 %v456_v53, 0.0  ;;  %v540_v62 = vmax.f32 %v476_v54, 0.0 }
  0xb6   : > { %v916_v51 = vpack.c.bf16 %v547_v49, %v546_v47  ;;  %v936_v52 = vpack.c.bf16 %v555_v50, %v554_v48 }
  0xb8   : > { %960 = vst [vmem:[%s1253_s21 + $0x40] sm:$0xff] %v916_v51  }
  0xb9   : > { %964 = vst [vmem:[%s1253_s21 + $0x60] sm:$0xff] %v936_v52   ;;  %v495_v55 = vpop.f32.mrf.mxu2  ;;  %v515_v56 = vpop.f32.mrf.mxu3 }
  0xba   : > { %v457_v57 = vpop.f32.mrf.mxu0  ;;  %v477_v58 = vpop.f32.mrf.mxu1  ;;  %v496_v3 = vadd.f32 %v1242_v24, %v495_v55  ;;  %v516_v4 = vadd.f32 %v1242_v24, %v515_v56 }
  0xbb   : > { %v458_v59 = vadd.f32 %v1242_v24, %v457_v57  ;;  %v478_v60 = vadd.f32 %v1242_v24, %v477_v58 }
  0xbc   : > { %v548_v11 = vmax.f32 %v496_v3, 0.0  ;;  %v556_v12 = vmax.f32 %v516_v4, 0.0 }
  0xbd   : > { %v533_v63 = vmax.f32 %v458_v59, 0.0  ;;  %v541_v0 = vmax.f32 %v478_v60, 0.0 }
  0xbf   : > { %v881_v1 = vpack.c.bf16 %v533_v63, %v532_v61  ;;  %v901_v2 = vpack.c.bf16 %v541_v0, %v540_v62 }
  0xc1   : > { %953 = vst [vmem:[%s1253_s21 + $0x8] sm:$0xff] %v881_v1   ;;  %v497_v5 = vpop.f32.mrf.mxu2  ;;  %v517_v6 = vpop.f32.mrf.mxu3 }
  0xc2   : > { %957 = vst [vmem:[%s1253_s21 + $0x28] sm:$0xff] %v901_v2   ;;  %v498_v7 = vadd.f32 %v1242_v24, %v497_v5  ;;  %v518_v8 = vadd.f32 %v1242_v24, %v517_v6  ;;  %v460_v9 = vpop.f32.mrf.mxu0  ;;  %v480_v10 = vpop.f32.mrf.mxu1 }
  0xc3   : > { %v461_v17 = vadd.f32 %v1242_v24, %v460_v9  ;;  %v481_v18 = vadd.f32 %v1242_v24, %v480_v10 }
  0xc4   : > { %v549_v13 = vmax.f32 %v498_v7, 0.0  ;;  %v557_v14 = vmax.f32 %v518_v8, 0.0 }
  0xc5   : > { %v534_v26 = vmax.f32 %v461_v17, 0.0  ;;  %v542_v27 = vmax.f32 %v481_v18, 0.0 }
  0xc6   : > { %v921_v15 = vpack.c.bf16 %v549_v13, %v548_v11  ;;  %v941_v16 = vpack.c.bf16 %v557_v14, %v556_v12 }
  0xc8   : > { %961 = vst [vmem:[%s1253_s21 + $0x48] sm:$0xff] %v921_v15  }
  0xc9   : > { %965 = vst [vmem:[%s1253_s21 + $0x68] sm:$0xff] %v941_v16   ;;  %v500_v19 = vpop.f32.mrf.mxu2  ;;  %v520_v20 = vpop.f32.mrf.mxu3 }
  0xca   : > { %v462_v21 = vpop.f32.mrf.mxu0  ;;  %v482_v22 = vpop.f32.mrf.mxu1  ;;  %v501_v32 = vadd.f32 %v1242_v24, %v500_v19  ;;  %v521_v33 = vadd.f32 %v1242_v24, %v520_v20 }
  0xcb   : > { %v463_v23 = vadd.f32 %v1242_v24, %v462_v21  ;;  %v483_v25 = vadd.f32 %v1242_v24, %v482_v22 }
  0xcc   : > { %v550_v40 = vmax.f32 %v501_v32, 0.0  ;;  %v558_v41 = vmax.f32 %v521_v33, 0.0 }
  0xcd   : > { %v535_v28 = vmax.f32 %v463_v23, 0.0  ;;  %v543_v29 = vmax.f32 %v483_v25, 0.0 }
  0xcf   : > { %v886_v30 = vpack.c.bf16 %v535_v28, %v534_v26  ;;  %v906_v31 = vpack.c.bf16 %v543_v29, %v542_v27 }
  0xd1   : > { %954 = vst [vmem:[%s1253_s21 + $0x10] sm:$0xff] %v886_v30   ;;  %v502_v34 = vpop.f32.mrf.mxu2  ;;  %v522_v35 = vpop.f32.mrf.mxu3 }
  0xd2   : > { %958 = vst [vmem:[%s1253_s21 + $0x30] sm:$0xff] %v906_v31   ;;  %v503_v36 = vadd.f32 %v1242_v24, %v502_v34  ;;  %v523_v37 = vadd.f32 %v1242_v24, %v522_v35  ;;  %v465_v38 = vpop.f32.mrf.mxu0  ;;  %v485_v39 = vpop.f32.mrf.mxu1 }
  0xd3   : > { %v466_v46 = vadd.f32 %v1242_v24, %v465_v38  ;;  %v486_v47 = vadd.f32 %v1242_v24, %v485_v39 }
  0xd4   : > { %v551_v42 = vmax.f32 %v503_v36, 0.0  ;;  %v559_v43 = vmax.f32 %v523_v37, 0.0 }
  0xd5   : > { %v536_v54 = vmax.f32 %v466_v46, 0.0  ;;  %v544_v55 = vmax.f32 %v486_v47, 0.0 }
  0xd6   : > { %v926_v44 = vpack.c.bf16 %v551_v42, %v550_v40  ;;  %v946_v45 = vpack.c.bf16 %v559_v43, %v558_v41 }
  0xd8   : > { %962 = vst [vmem:[%s1253_s21 + $0x50] sm:$0xff] %v926_v44  }
  0xd9   : > { %966 = vst [vmem:[%s1253_s21 + $0x70] sm:$0xff] %v946_v45   ;;  %v505_v48 = vpop.f32.mrf.mxu2  ;;  %v525_v49 = vpop.f32.mrf.mxu3 }
  0xda   : > { %v467_v50 = vpop.f32.mrf.mxu0  ;;  %v487_v51 = vpop.f32.mrf.mxu1  ;;  %v506_v60 = vadd.f32 %v1242_v24, %v505_v48  ;;  %v526_v61 = vadd.f32 %v1242_v24, %v525_v49 }
  0xdb   : > { %v468_v52 = vadd.f32 %v1242_v24, %v467_v50  ;;  %v488_v53 = vadd.f32 %v1242_v24, %v487_v51 }
  0xdc   : > { %v552_v2 = vmax.f32 %v506_v60, 0.0  ;;  %v560_v3 = vmax.f32 %v526_v61, 0.0 }
  0xdd   : > { %v537_v56 = vmax.f32 %v468_v52, 0.0  ;;  %v545_v57 = vmax.f32 %v488_v53, 0.0 }
  0xdf   : > { %v891_v58 = vpack.c.bf16 %v537_v56, %v536_v54  ;;  %v911_v59 = vpack.c.bf16 %v545_v57, %v544_v55 }
  0xe1   : > { %955 = vst [vmem:[%s1253_s21 + $0x18] sm:$0xff] %v891_v58   ;;  %v507_v62 = vpop.f32.mrf.mxu2  ;;  %v527_v63 = vpop.f32.mrf.mxu3 }
  0xe2   : > { %959 = vst [vmem:[%s1253_s21 + $0x38] sm:$0xff] %v911_v59   ;;  %v508_v0 = vadd.f32 %v1242_v24, %v507_v62  ;;  %v528_v1 = vadd.f32 %v1242_v24, %v527_v63 }
  0xe4   : > { %v553_v4 = vmax.f32 %v508_v0, 0.0  ;;  %v561_v5 = vmax.f32 %v528_v1, 0.0 }
  0xe6   : > { %v931_v6 = vpack.c.bf16 %v553_v4, %v552_v2  ;;  %v951_v7 = vpack.c.bf16 %v561_v5, %v560_v3 }
  0xe8   : > { %963 = vst [vmem:[%s1253_s21 + $0x58] sm:$0xff] %v931_v6  }
  0xe9   : > { %967 = vst [vmem:[%s1253_s21 + $0x78] sm:$0xff] %v951_v7  }
  0xea   : > { %1062 = shalt.err (!%p1059_p5)
}
  0xeb   : > { %s1115_s11 = smov 64   ;;  %s1116_s18 = smov 4  }
  0xec   : > { %977 = dma.vmem_to_hbm [thread:$0]  (%p1177_p4), %s641_s15, 2048, %s643_s29, %s627_s30, %s1115_s11, %s1115_s11, %s1116_s18  }
  0xed PF: > { %p983_p6 = scmp.ge.s32.totalorder %s1113_s17, 2  ;;  %s657_s19 = sand.u32 1, %s1093_s12  }
  0xee   : > { %s658_s21 = scalar_lea.sflag [#allocation3], %s657_s19 }
  0xef   : > { %p980_p7 = pnand %p983_p6, %p1184_p8 }
  0xf1   : > { %p981_p9 = pneg %p980_p7 }
  0xf3   : > { %1088 = dma.done.wait (%p981_p9), %s658_s21, 2048  }
  0xf4   : > { %1090 = vsyncadd (%p981_p9), %s658_s21, 4294965248  ;;  %s16_s17 = sadd.s32 1, %s1113_s17   ;;  %s1342_s12 = smov %s1097_s13 }
  0xf5   : > { %p13_p10 = scmp.ge.s32.totalorder %s16_s17, 4   ;;  %s1343_s13 = smov %s1101_s14 }
  0xf6   : > { %s1344_s14 = smov %s1190_s25  ;;  %s1345_s15 = smov %s1109_s16 }
  0xf7   : > { %s1346_s16 = smov %s1348_s20  ;;  %15 = sbr.rel (!%p13_p10) target bundleno = 4 (0x4), region = 73 }
  0xfc   :  { %664 = vsyncpa [#allocation3], 1 }
  0xfd   :  { %666 = vsyncpa [#allocation3 + $0x1], 1 }

</bundles_post_ra>
